<compile_context>
chip_gen: v5e
topology: v5e:2x2
jax: 0.10.0
libtpu: 0.0.40
codegen_flags: <defaults>
</compile_context>

<pallas_src>
import math
import functools

import jax
import jax.numpy as jnp
from jax.experimental import pallas as pl
from jax.experimental.pallas import tpu as pltpu


def _round_up(x, m):
    return (x + m - 1) // m * m


def _erf(x):
    # Abramowitz & Stegun 7.1.26 (|err| < 1.5e-7): exact-GELU accuracy without
    # depending on an erf lowering; uses only mul/add/div/exp/select (VPU + EUP).
    ax = jnp.abs(x)
    t = 1.0 / (1.0 + 0.3275911 * ax)
    poly = ((((1.061405429 * t - 1.453152027) * t + 1.421413741) * t
             - 0.284496736) * t + 0.254829592) * t
    y = 1.0 - poly * jnp.exp(-ax * ax)
    return jnp.where(x < 0, -y, y)


def _vit_block_kernel(num_heads, seq_len,
                      x_ref,
                      ln1g_ref, ln1b_ref,
                      wq_ref, bq_ref, wk_ref, bk_ref, wv_ref, bv_ref,
                      wo_ref, bo_ref,
                      ln2g_ref, ln2b_ref,
                      w1_ref, b1_ref, w2_ref, b2_ref,
                      o_ref,
                      s_scr, attn_scr):
    eps = 1e-5
    bf16 = jnp.bfloat16
    S_pad, D = x_ref.shape            # full (padded) sequence slab for this batch elem
    TQ = o_ref.shape[0]               # query-row tile handled by this program
    H = num_heads
    dh = D // H
    scale = 1.0 / math.sqrt(dh)

    def layernorm(v, g_ref, b_ref):   # one-pass stats, f32 elementwise path
        mu = jnp.mean(v, axis=-1, keepdims=True)
        var = jnp.mean(v * v, axis=-1, keepdims=True) - mu * mu
        return (v - mu) * jax.lax.rsqrt(var + eps) * g_ref[0] + b_ref[0]

    # ---- LayerNorm 1 over the full (padded) sequence: needed for K / V ----
    x_full = x_ref[...].astype(jnp.float32)                       # (S_pad, D)
    h_full_bf = layernorm(x_full, ln1g_ref, ln1b_ref).astype(bf16)

    k_bf = (jnp.dot(h_full_bf, wk_ref[...],
                    preferred_element_type=jnp.float32) + bk_ref[0]).astype(bf16)
    v_bf = (jnp.dot(h_full_bf, wv_ref[...],
                    preferred_element_type=jnp.float32) + bv_ref[0]).astype(bf16)

    # ---- query tile (reuse the full-slab LayerNorm; never recompute it) ----
    if TQ == S_pad:
        x_q = x_full
        h_q_bf = h_full_bf
    else:
        q_start = pl.multiple_of(pl.program_id(1) * TQ, TQ)
        x_q = jax.lax.dynamic_slice_in_dim(x_full, q_start, TQ, axis=0)
        h_q_bf = jax.lax.dynamic_slice_in_dim(h_full_bf, q_start, TQ, axis=0)

    q = jnp.dot(h_q_bf, wq_ref[...],
                preferred_element_type=jnp.float32) + bq_ref[0]   # (TQ, D) f32
    q_bf = (q * scale).astype(bf16)

    # ---- multi-head attention ----
    # Per-head QK^T written straight into the scores scratch (row slices at h*TQ,
    # sublane-aligned) -> live set bounded to one head, no concatenate copies.
    # TODO(synk): if bundle dumps show the dh-wide lane-misaligned column slices of
    #             q/k/v dominating, stage q/k/v through a head-major scratch once.
    for h in range(H):
        lo = h * dh
        s_scr[h * TQ:(h + 1) * TQ, :] = jax.lax.dot_general(
            q_bf[:, lo:lo + dh], k_bf[:, lo:lo + dh],
            (((1,), (1,)), ((), ())),
            preferred_element_type=jnp.float32)                   # (TQ, S_pad)

    # One softmax over all heads (rows stacked along the sublane axis).
    s = s_scr[...]
    if seq_len < S_pad:               # mask padded key positions (static branch)
        key_idx = jax.lax.broadcasted_iota(jnp.int32, s.shape, 1)
        s = jnp.where(key_idx < seq_len, s, -1e30)
    m = jnp.max(s, axis=-1, keepdims=True)
    p = jnp.exp(s - m)
    denom = jnp.sum(p, axis=-1, keepdims=True)
    s_scr[...] = p * pl.reciprocal(denom, approx=True)            # overwrite scores with probs

    # Per-head P@V written straight into the (TQ, D) attention scratch.
    for h in range(H):
        lo = h * dh
        ph = s_scr[h * TQ:(h + 1) * TQ, :].astype(bf16)           # aligned f32 load + cast
        attn_scr[:, lo:lo + dh] = jnp.dot(ph, v_bf[:, lo:lo + dh],
                                          preferred_element_type=jnp.float32)

    attn = jnp.dot(attn_scr[...].astype(bf16), wo_ref[...],
                   preferred_element_type=jnp.float32) + bo_ref[0]

    x1 = attn + x_q                                               # residual 1 (f32)

    # ---- LayerNorm 2 + MLP: Linear(D,4D) -> exact GELU -> Linear(4D,D) ----
    h2_bf = layernorm(x1, ln2g_ref, ln2b_ref).astype(bf16)
    mlp = jnp.dot(h2_bf, w1_ref[...],
                  preferred_element_type=jnp.float32) + b1_ref[0]   # (TQ, 4D)
    g = 0.5 * mlp * (1.0 + _erf(mlp * (1.0 / math.sqrt(2.0))))      # exact GELU (erf poly)
    y = jnp.dot(g.astype(bf16), w2_ref[...],
                preferred_element_type=jnp.float32) + b2_ref[0]

    o_ref[...] = (y + x1).astype(o_ref.dtype)                     # residual 2


def prepare_params(params):
    """One-time (outside jit) prep: cast the six GEMM weights to bf16."""
    (ln1g, ln1b, wq_t, bq, wk_t, bk, wv_t, bv, wo_t, bo,
     ln2g, ln2b, w1_t, b1, w2_t, b2) = params
    bf16 = jnp.bfloat16
    return (ln1g, ln1b, wq_t.astype(bf16), bq, wk_t.astype(bf16), bk,
            wv_t.astype(bf16), bv, wo_t.astype(bf16), bo,
            ln2g, ln2b, w1_t.astype(bf16), b1, w2_t.astype(bf16), b2)


def vit_encoder_block(x_sbd, params, num_heads):
    """x_sbd: (S, B, D) float32, PyTorch MHA default layout."""
    S, B, D = x_sbd.shape
    assert D % num_heads == 0
    (ln1g, ln1b, wq_t, bq, wk_t, bk, wv_t, bv, wo_t, bo,
     ln2g, ln2b, w1_t, b1, w2_t, b2) = params

    bf16 = jnp.bfloat16
    # No-op when prepared (bf16) params are passed; safety net for f32 params.
    wq_t, wk_t, wv_t, wo_t, w1_t, w2_t = (
        w.astype(bf16) for w in (wq_t, wk_t, wv_t, wo_t, w1_t, w2_t))

    x = jnp.transpose(x_sbd, (1, 0, 2)).astype(jnp.float32)       # (B, S, D)

    # Tiling: query-tile only when B == 1 and S > 128 (occupy v7x's 2nd TensorCore
    # at batch=1).  Otherwise a single full-slab tile -> K/V + LN1 computed once and
    # larger M for the projection / MLP GEMMs (best on single-TC v5e/v6e).
    if B == 1 and S > 128:
        S_pad = _round_up(S, 128)
        TQ = 128
    else:
        S_pad = _round_up(S, 8)
        TQ = S_pad
    if S_pad != S:
        x = jnp.pad(x, ((0, 0), (0, S_pad - S), (0, 0)))
    NQ = S_pad // TQ

    weights = [ln1g, ln1b, wq_t, bq, wk_t, bk, wv_t, bv, wo_t, bo,
               ln2g, ln2b, w1_t, b1, w2_t, b2]

    # Constant index_map -> single-buffer the weights (no point double-buffering).
    def w_spec(a):
        return pl.BlockSpec(a.shape, lambda b, t: (0, 0),
                            pipeline_mode=pl.Buffered(1))

    in_specs = [pl.BlockSpec((pl.Squeezed(), S_pad, D), lambda b, t: (b, 0, 0))]
    in_specs += [w_spec(w) for w in weights]
    out_spec = pl.BlockSpec((pl.Squeezed(), TQ, D), lambda b, t: (b, t, 0))

    scratch_shapes = [
        pltpu.VMEM((num_heads * TQ, S_pad), jnp.float32),   # scores, reused for probs
        pltpu.VMEM((TQ, D), jnp.float32),                   # per-head attention output
    ]

    # Explicit scoped-VMEM budget with headroom below the physical ceiling.
    weight_bytes = sum(int(w.size) * w.dtype.itemsize for w in weights)
    scratch_bytes = 4 * (num_heads * TQ * S_pad + TQ * D)
    act_bytes = 4 * (2 * S_pad * D                    # x block (double-buffered)
                     + 2 * TQ * D                     # out block (double-buffered)
                     + 6 * S_pad * D                  # LN1 out, K, V (+temps)
                     + 2 * num_heads * TQ * S_pad     # softmax temporaries
                     + 3 * TQ * 4 * D                 # MLP hidden + GELU temps
                     + 6 * TQ * D)                    # q / attn / residual temps
    try:
        vmem_cap = int(pltpu.get_tpu_info().vmem_capacity_bytes)
    except Exception:
        vmem_cap = 64 * 2**20
    vmem_ceiling = (vmem_cap * 3) // 4                # never request all physical VMEM
    vmem_limit = int(min(max(1.3 * (weight_bytes + act_bytes + scratch_bytes),
                             32 * 2**20), vmem_ceiling))

    flops = int(2 * B * S_pad * D * D * (2 * NQ + 10)   # K/V per tile + Q/out proj + MLP
                + 4 * B * S_pad * S_pad * D)            # QK^T + P@V
    transcendentals = int(B * (num_heads * S_pad * S_pad + 4 * S_pad * D))
    bytes_accessed = int(weight_bytes
                         + B * (NQ * S_pad * D * 4      # x slab read (once per q tile)
                                + S_pad * D * 4))       # output write

    kernel = functools.partial(_vit_block_kernel, num_heads, S)
    out = pl.pallas_call(
        kernel,
        out_shape=jax.ShapeDtypeStruct((B, S_pad, D), jnp.float32),
        grid_spec=pltpu.PrefetchScalarGridSpec(
            num_scalar_prefetch=0,
            grid=(B, NQ),
            in_specs=in_specs,
            out_specs=out_spec,
            scratch_shapes=scratch_shapes,
        ),
        compiler_params=pltpu.CompilerParams(
            dimension_semantics=("parallel", "parallel"),
            vmem_limit_bytes=vmem_limit),
        cost_estimate=pl.CostEstimate(flops=flops,
                                      transcendentals=transcendentals,
                                      bytes_accessed=bytes_accessed),
    )(x, *weights)

    out = out[:, :S, :]
    return jnp.transpose(out, (1, 0, 2))                          # back to (S, B, D)


def make_params(key, d_model):
    """Deterministic synthetic parameters (shapes match the PyTorch module), f32."""
    D = d_model
    ks = jax.random.split(key, 12)
    sc = 0.02
    ln1g = (1.0 + sc * jax.random.normal(ks[0], (1, D))).astype(jnp.float32)
    ln1b = (sc * jax.random.normal(ks[1], (1, D))).astype(jnp.float32)
    ln2g = (1.0 + sc * jax.random.normal(ks[2], (1, D))).astype(jnp.float32)
    ln2b = (sc * jax.random.normal(ks[3], (1, D))).astype(jnp.float32)
    # MHA in_proj_weight is (3D, D); split into q/k/v, store transposed (D, D)
    in_proj_w = sc * jax.random.normal(ks[4], (3 * D, D))
    in_proj_b = sc * jax.random.normal(ks[5], (3 * D,))
    wq_t = in_proj_w[0 * D:1 * D].T.astype(jnp.float32)
    wk_t = in_proj_w[1 * D:2 * D].T.astype(jnp.float32)
    wv_t = in_proj_w[2 * D:3 * D].T.astype(jnp.float32)
    bq = in_proj_b[0 * D:1 * D].reshape(1, D).astype(jnp.float32)
    bk = in_proj_b[1 * D:2 * D].reshape(1, D).astype(jnp.float32)
    bv = in_proj_b[2 * D:3 * D].reshape(1, D).astype(jnp.float32)
    wo_t = (sc * jax.random.normal(ks[6], (D, D))).T.astype(jnp.float32)
    bo = (sc * jax.random.normal(ks[7], (1, D))).astype(jnp.float32)
    w1_t = (sc * jax.random.normal(ks[8], (4 * D, D))).T.astype(jnp.float32)
    b1 = (sc * jax.random.normal(ks[9], (1, 4 * D))).astype(jnp.float32)
    w2_t = (sc * jax.random.normal(ks[10], (D, 4 * D))).T.astype(jnp.float32)
    b2 = (sc * jax.random.normal(ks[11], (1, D))).astype(jnp.float32)
    return (ln1g, ln1b, wq_t, bq, wk_t, bk, wv_t, bv, wo_t, bo,
            ln2g, ln2b, w1_t, b1, w2_t, b2)


def reference_block(x_sbd, params, num_heads):
    """Pure-JAX f32 reference mirroring PyTorch eval-mode forward."""
    (ln1g, ln1b, wq_t, bq, wk_t, bk, wv_t, bv, wo_t, bo,
     ln2g, ln2b, w1_t, b1, w2_t, b2) = params
    eps = 1e-5
    x = jnp.transpose(x_sbd, (1, 0, 2)).astype(jnp.float32)       # (B, S, D)
    B, S, D = x.shape
    dh = D // num_heads

    def ln(v, g, b):
        mu = jnp.mean(v, -1, keepdims=True)
        var = jnp.mean((v - mu) ** 2, -1, keepdims=True)
        return (v - mu) / jnp.sqrt(var + eps) * g + b

    h = ln(x, ln1g[0], ln1b[0])
    q = h @ wq_t + bq[0]
    k = h @ wk_t + bk[0]
    v = h @ wv_t + bv[0]
    q = q.reshape(B, S, num_heads, dh).transpose(0, 2, 1, 3) / math.sqrt(dh)
    k = k.reshape(B, S, num_heads, dh).transpose(0, 2, 1, 3)
    v = v.reshape(B, S, num_heads, dh).transpose(0, 2, 1, 3)
    s = jnp.einsum("bhqd,bhkd->bhqk", q, k)
    p = jax.nn.softmax(s, axis=-1)
    a = jnp.einsum("bhqk,bhkd->bhqd", p, v).transpose(0, 2, 1, 3).reshape(B, S, D)
    a = a @ wo_t + bo[0]
    x1 = a + x
    h2 = ln(x1, ln2g[0], ln2b[0])
    m = h2 @ w1_t + b1[0]
    g = 0.5 * m * (1.0 + jax.lax.erf(m / math.sqrt(2.0)))
    y = g @ w2_t + b2[0]
    out = y + x1
    return jnp.transpose(out, (1, 0, 2))


if __name__ == "__main__":
    S, B, D, H = 8, 2, 32, 4
    key = jax.random.PRNGKey(0)
    kx, kp = jax.random.split(key)
    x = jax.random.normal(kx, (S, B, D), dtype=jnp.float32)
    params = make_params(kp, D)
    kparams = prepare_params(params)          # one-time bf16 weight cast (outside jit)

    vit_block = jax.jit(vit_encoder_block, static_argnums=(2,))
    out = jax.block_until_ready(vit_block(x, kparams, H))

    ref = reference_block(x, params, H)
    assert out.shape == (S, B, D)
    # bf16 matmul path vs f32 reference -> tolerance deliberately relaxed.
    max_err = float(jnp.max(jnp.abs(out - ref)))
    assert jnp.allclose(out, ref, atol=2e-2, rtol=2e-2), \
        f"mismatch vs reference (max abs err {max_err})"

    print("KERNEL_OK")
</pallas_src>

<mosaic_0001>
module attributes {stable_mosaic.version = 11 : i64} {
  func.func @_vit_block_kernel(%arg0: i32, %arg1: i32, %arg2: memref<1x8x32xf32, #tpu.memory_space<vmem>>, %arg3: memref<1x32xf32, #tpu.memory_space<vmem>>, %arg4: memref<1x32xf32, #tpu.memory_space<vmem>>, %arg5: memref<32x32xbf16, #tpu.memory_space<vmem>>, %arg6: memref<1x32xf32, #tpu.memory_space<vmem>>, %arg7: memref<32x32xbf16, #tpu.memory_space<vmem>>, %arg8: memref<1x32xf32, #tpu.memory_space<vmem>>, %arg9: memref<32x32xbf16, #tpu.memory_space<vmem>>, %arg10: memref<1x32xf32, #tpu.memory_space<vmem>>, %arg11: memref<32x32xbf16, #tpu.memory_space<vmem>>, %arg12: memref<1x32xf32, #tpu.memory_space<vmem>>, %arg13: memref<1x32xf32, #tpu.memory_space<vmem>>, %arg14: memref<1x32xf32, #tpu.memory_space<vmem>>, %arg15: memref<32x128xbf16, #tpu.memory_space<vmem>>, %arg16: memref<1x128xf32, #tpu.memory_space<vmem>>, %arg17: memref<128x32xbf16, #tpu.memory_space<vmem>>, %arg18: memref<1x32xf32, #tpu.memory_space<vmem>>, %arg19: memref<1x8x32xf32, #tpu.memory_space<vmem>>, %arg20: memref<32x8xf32, #tpu.memory_space<vmem>>, %arg21: memref<8x32xf32, #tpu.memory_space<vmem>>) attributes {dimension_semantics = [#tpu.dimension_semantics<parallel>, #tpu.dimension_semantics<parallel>], iteration_bounds = array<i64: 2, 1>, scalar_prefetch = 0 : i64, scratch_operands = 2 : i64, tpu.core_type = #tpu.core_type<tc>, window_params = [{transform_indices = @transform_0, window_bounds = array<i64: 1, 8, 32>}, {pipeline_mode = #tpu.pipeline_mode<synchronous>, transform_indices = @transform_1, window_bounds = array<i64: 1, 32>}, {pipeline_mode = #tpu.pipeline_mode<synchronous>, transform_indices = @transform_2, window_bounds = array<i64: 1, 32>}, {pipeline_mode = #tpu.pipeline_mode<synchronous>, transform_indices = @transform_3, window_bounds = array<i64: 32, 32>}, {pipeline_mode = #tpu.pipeline_mode<synchronous>, transform_indices = @transform_4, window_bounds = array<i64: 1, 32>}, {pipeline_mode = #tpu.pipeline_mode<synchronous>, transform_indices = @transform_5, window_bounds = array<i64: 32, 32>}, {pipeline_mode = #tpu.pipeline_mode<synchronous>, transform_indices = @transform_6, window_bounds = array<i64: 1, 32>}, {pipeline_mode = #tpu.pipeline_mode<synchronous>, transform_indices = @transform_7, window_bounds = array<i64: 32, 32>}, {pipeline_mode = #tpu.pipeline_mode<synchronous>, transform_indices = @transform_8, window_bounds = array<i64: 1, 32>}, {pipeline_mode = #tpu.pipeline_mode<synchronous>, transform_indices = @transform_9, window_bounds = array<i64: 32, 32>}, {pipeline_mode = #tpu.pipeline_mode<synchronous>, transform_indices = @transform_10, window_bounds = array<i64: 1, 32>}, {pipeline_mode = #tpu.pipeline_mode<synchronous>, transform_indices = @transform_11, window_bounds = array<i64: 1, 32>}, {pipeline_mode = #tpu.pipeline_mode<synchronous>, transform_indices = @transform_12, window_bounds = array<i64: 1, 32>}, {pipeline_mode = #tpu.pipeline_mode<synchronous>, transform_indices = @transform_13, window_bounds = array<i64: 32, 128>}, {pipeline_mode = #tpu.pipeline_mode<synchronous>, transform_indices = @transform_14, window_bounds = array<i64: 1, 128>}, {pipeline_mode = #tpu.pipeline_mode<synchronous>, transform_indices = @transform_15, window_bounds = array<i64: 128, 32>}, {pipeline_mode = #tpu.pipeline_mode<synchronous>, transform_indices = @transform_16, window_bounds = array<i64: 1, 32>}, {transform_indices = @transform_17, window_bounds = array<i64: 1, 8, 32>}]} {
    %c0 = arith.constant 0 : index
    %c0_0 = arith.constant 0 : index
    %c0_1 = arith.constant 0 : index
    %0 = vector.load %arg2[%c0, %c0_0, %c0_1] : memref<1x8x32xf32, #tpu.memory_space<vmem>>, vector<1x8x32xf32>
    %1 = vector.shape_cast %0 : vector<1x8x32xf32> to vector<8x32xf32>
    %cst = arith.constant dense<0.000000e+00> : vector<8xf32>
    %2 = vector.multi_reduction <add>, %1, %cst [1] : vector<8x32xf32> to vector<8xf32>
    %3 = vector.shape_cast %2 : vector<8xf32> to vector<8x1xf32>
    %cst_2 = arith.constant 3.200000e+01 : f32
    %4 = vector.broadcast %cst_2 : f32 to vector<8x1xf32>
    %5 = arith.divf %3, %4 : vector<8x1xf32>
    %6 = arith.mulf %1, %1 : vector<8x32xf32>
    %cst_3 = arith.constant dense<0.000000e+00> : vector<8xf32>
    %7 = vector.multi_reduction <add>, %6, %cst_3 [1] : vector<8x32xf32> to vector<8xf32>
    %8 = vector.shape_cast %7 : vector<8xf32> to vector<8x1xf32>
    %cst_4 = arith.constant 3.200000e+01 : f32
    %9 = vector.broadcast %cst_4 : f32 to vector<8x1xf32>
    %10 = arith.divf %8, %9 : vector<8x1xf32>
    %11 = arith.mulf %5, %5 : vector<8x1xf32>
    %12 = arith.subf %10, %11 : vector<8x1xf32>
    %13 = vector.broadcast %5 : vector<8x1xf32> to vector<8x32xf32>
    %14 = arith.subf %1, %13 : vector<8x32xf32>
    %cst_5 = arith.constant 9.99999974E-6 : f32
    %15 = vector.broadcast %cst_5 : f32 to vector<8x1xf32>
    %16 = arith.addf %12, %15 : vector<8x1xf32>
    %17 = math.rsqrt %16 : vector<8x1xf32>
    %18 = vector.broadcast %17 : vector<8x1xf32> to vector<8x32xf32>
    %19 = arith.mulf %14, %18 : vector<8x32xf32>
    %c0_6 = arith.constant 0 : index
    %c0_7 = arith.constant 0 : index
    %20 = vector.load %arg3[%c0_6, %c0_7] : memref<1x32xf32, #tpu.memory_space<vmem>>, vector<1x32xf32>
    %21 = vector.shape_cast %20 : vector<1x32xf32> to vector<32xf32>
    %22 = vector.shape_cast %21 : vector<32xf32> to vector<1x32xf32>
    %23 = vector.broadcast %22 : vector<1x32xf32> to vector<8x32xf32>
    %24 = arith.mulf %19, %23 : vector<8x32xf32>
    %c0_8 = arith.constant 0 : index
    %c0_9 = arith.constant 0 : index
    %25 = vector.load %arg4[%c0_8, %c0_9] : memref<1x32xf32, #tpu.memory_space<vmem>>, vector<1x32xf32>
    %26 = vector.shape_cast %25 : vector<1x32xf32> to vector<32xf32>
    %27 = vector.shape_cast %26 : vector<32xf32> to vector<1x32xf32>
    %28 = vector.broadcast %27 : vector<1x32xf32> to vector<8x32xf32>
    %29 = arith.addf %24, %28 : vector<8x32xf32>
    %30 = arith.truncf %29 : vector<8x32xf32> to vector<8x32xbf16>
    %c0_10 = arith.constant 0 : index
    %c0_11 = arith.constant 0 : index
    %31 = vector.load %arg7[%c0_10, %c0_11] : memref<32x32xbf16, #tpu.memory_space<vmem>>, vector<32x32xbf16>
    %cst_12 = arith.constant dense<0.000000e+00> : vector<8x32xf32>
    %32 = tpu.matmul %30, %31, %cst_12 {dimension_numbers = #tpu.dot_dimension_numbers<[1], [0], [0], [1], [0, 0, 1, 1], [], []>} : vector<8x32xbf16>, vector<32x32xbf16>, vector<8x32xf32> -> vector<8x32xf32>
    %c0_13 = arith.constant 0 : index
    %c0_14 = arith.constant 0 : index
    %33 = vector.load %arg8[%c0_13, %c0_14] : memref<1x32xf32, #tpu.memory_space<vmem>>, vector<1x32xf32>
    %34 = vector.shape_cast %33 : vector<1x32xf32> to vector<32xf32>
    %35 = vector.shape_cast %34 : vector<32xf32> to vector<1x32xf32>
    %36 = vector.broadcast %35 : vector<1x32xf32> to vector<8x32xf32>
    %37 = arith.addf %32, %36 : vector<8x32xf32>
    %38 = arith.truncf %37 : vector<8x32xf32> to vector<8x32xbf16>
    %c0_15 = arith.constant 0 : index
    %c0_16 = arith.constant 0 : index
    %39 = vector.load %arg9[%c0_15, %c0_16] : memref<32x32xbf16, #tpu.memory_space<vmem>>, vector<32x32xbf16>
    %cst_17 = arith.constant dense<0.000000e+00> : vector<8x32xf32>
    %40 = tpu.matmul %30, %39, %cst_17 {dimension_numbers = #tpu.dot_dimension_numbers<[1], [0], [0], [1], [0, 0, 1, 1], [], []>} : vector<8x32xbf16>, vector<32x32xbf16>, vector<8x32xf32> -> vector<8x32xf32>
    %c0_18 = arith.constant 0 : index
    %c0_19 = arith.constant 0 : index
    %41 = vector.load %arg10[%c0_18, %c0_19] : memref<1x32xf32, #tpu.memory_space<vmem>>, vector<1x32xf32>
    %42 = vector.shape_cast %41 : vector<1x32xf32> to vector<32xf32>
    %43 = vector.shape_cast %42 : vector<32xf32> to vector<1x32xf32>
    %44 = vector.broadcast %43 : vector<1x32xf32> to vector<8x32xf32>
    %45 = arith.addf %40, %44 : vector<8x32xf32>
    %46 = arith.truncf %45 : vector<8x32xf32> to vector<8x32xbf16>
    %c0_20 = arith.constant 0 : index
    %c0_21 = arith.constant 0 : index
    %47 = vector.load %arg5[%c0_20, %c0_21] : memref<32x32xbf16, #tpu.memory_space<vmem>>, vector<32x32xbf16>
    %cst_22 = arith.constant dense<0.000000e+00> : vector<8x32xf32>
    %48 = tpu.matmul %30, %47, %cst_22 {dimension_numbers = #tpu.dot_dimension_numbers<[1], [0], [0], [1], [0, 0, 1, 1], [], []>} : vector<8x32xbf16>, vector<32x32xbf16>, vector<8x32xf32> -> vector<8x32xf32>
    %c0_23 = arith.constant 0 : index
    %c0_24 = arith.constant 0 : index
    %49 = vector.load %arg6[%c0_23, %c0_24] : memref<1x32xf32, #tpu.memory_space<vmem>>, vector<1x32xf32>
    %50 = vector.shape_cast %49 : vector<1x32xf32> to vector<32xf32>
    %51 = vector.shape_cast %50 : vector<32xf32> to vector<1x32xf32>
    %52 = vector.broadcast %51 : vector<1x32xf32> to vector<8x32xf32>
    %53 = arith.addf %48, %52 : vector<8x32xf32>
    %cst_25 = arith.constant 0.353553385 : f32
    %54 = vector.broadcast %cst_25 : f32 to vector<8x32xf32>
    %55 = arith.mulf %53, %54 : vector<8x32xf32>
    %56 = arith.truncf %55 : vector<8x32xf32> to vector<8x32xbf16>
    %57 = vector.extract_strided_slice %56 {offsets = [0, 0], sizes = [8, 8], strides = [1, 1]} : vector<8x32xbf16> to vector<8x8xbf16>
    %58 = vector.extract_strided_slice %38 {offsets = [0, 0], sizes = [8, 8], strides = [1, 1]} : vector<8x32xbf16> to vector<8x8xbf16>
    %cst_26 = arith.constant dense<0.000000e+00> : vector<8x8xf32>
    %59 = tpu.matmul %57, %58, %cst_26 {dimension_numbers = #tpu.dot_dimension_numbers<[1], [1], [0], [0], [0, 0, 1, 0], [], []>} : vector<8x8xbf16>, vector<8x8xbf16>, vector<8x8xf32> -> vector<8x8xf32>
    %c0_27 = arith.constant 0 : index
    %c0_28 = arith.constant 0 : index
    %60 = vector.load %arg20[%c0_27, %c0_28] : memref<32x8xf32, #tpu.memory_space<vmem>>, vector<8x8xf32>
    tpu.vector_store %arg20[%c0_27, %c0_28], %59 {strides = array<i32>} : memref<32x8xf32, #tpu.memory_space<vmem>>, vector<8x8xf32>,
    %61 = vector.extract_strided_slice %56 {offsets = [0, 8], sizes = [8, 8], strides = [1, 1]} : vector<8x32xbf16> to vector<8x8xbf16>
    %62 = vector.extract_strided_slice %38 {offsets = [0, 8], sizes = [8, 8], strides = [1, 1]} : vector<8x32xbf16> to vector<8x8xbf16>
    %cst_29 = arith.constant dense<0.000000e+00> : vector<8x8xf32>
    %63 = tpu.matmul %61, %62, %cst_29 {dimension_numbers = #tpu.dot_dimension_numbers<[1], [1], [0], [0], [0, 0, 1, 0], [], []>} : vector<8x8xbf16>, vector<8x8xbf16>, vector<8x8xf32> -> vector<8x8xf32>
    %c8 = arith.constant 8 : index
    %c0_30 = arith.constant 0 : index
    %64 = vector.load %arg20[%c8, %c0_30] : memref<32x8xf32, #tpu.memory_space<vmem>>, vector<8x8xf32>
    tpu.vector_store %arg20[%c8, %c0_30], %63 {strides = array<i32>} : memref<32x8xf32, #tpu.memory_space<vmem>>, vector<8x8xf32>,
    %65 = vector.extract_strided_slice %56 {offsets = [0, 16], sizes = [8, 8], strides = [1, 1]} : vector<8x32xbf16> to vector<8x8xbf16>
    %66 = vector.extract_strided_slice %38 {offsets = [0, 16], sizes = [8, 8], strides = [1, 1]} : vector<8x32xbf16> to vector<8x8xbf16>
    %cst_31 = arith.constant dense<0.000000e+00> : vector<8x8xf32>
    %67 = tpu.matmul %65, %66, %cst_31 {dimension_numbers = #tpu.dot_dimension_numbers<[1], [1], [0], [0], [0, 0, 1, 0], [], []>} : vector<8x8xbf16>, vector<8x8xbf16>, vector<8x8xf32> -> vector<8x8xf32>
    %c16 = arith.constant 16 : index
    %c0_32 = arith.constant 0 : index
    %68 = vector.load %arg20[%c16, %c0_32] : memref<32x8xf32, #tpu.memory_space<vmem>>, vector<8x8xf32>
    tpu.vector_store %arg20[%c16, %c0_32], %67 {strides = array<i32>} : memref<32x8xf32, #tpu.memory_space<vmem>>, vector<8x8xf32>,
    %69 = vector.extract_strided_slice %56 {offsets = [0, 24], sizes = [8, 8], strides = [1, 1]} : vector<8x32xbf16> to vector<8x8xbf16>
    %70 = vector.extract_strided_slice %38 {offsets = [0, 24], sizes = [8, 8], strides = [1, 1]} : vector<8x32xbf16> to vector<8x8xbf16>
    %cst_33 = arith.constant dense<0.000000e+00> : vector<8x8xf32>
    %71 = tpu.matmul %69, %70, %cst_33 {dimension_numbers = #tpu.dot_dimension_numbers<[1], [1], [0], [0], [0, 0, 1, 0], [], []>} : vector<8x8xbf16>, vector<8x8xbf16>, vector<8x8xf32> -> vector<8x8xf32>
    %c24 = arith.constant 24 : index
    %c0_34 = arith.constant 0 : index
    %72 = vector.load %arg20[%c24, %c0_34] : memref<32x8xf32, #tpu.memory_space<vmem>>, vector<8x8xf32>
    tpu.vector_store %arg20[%c24, %c0_34], %71 {strides = array<i32>} : memref<32x8xf32, #tpu.memory_space<vmem>>, vector<8x8xf32>,
    %c0_35 = arith.constant 0 : index
    %c0_36 = arith.constant 0 : index
    %73 = vector.load %arg20[%c0_35, %c0_36] : memref<32x8xf32, #tpu.memory_space<vmem>>, vector<32x8xf32>
    %cst_37 = arith.constant dense<0xFF800000> : vector<32xf32>
    %74 = vector.multi_reduction <maximumf>, %73, %cst_37 [1] : vector<32x8xf32> to vector<32xf32>
    %75 = vector.shape_cast %74 : vector<32xf32> to vector<32x1xf32>
    %76 = vector.broadcast %75 : vector<32x1xf32> to vector<32x8xf32>
    %77 = arith.subf %73, %76 : vector<32x8xf32>
    %78 = math.exp %77 : vector<32x8xf32>
    %cst_38 = arith.constant dense<0.000000e+00> : vector<32xf32>
    %79 = vector.multi_reduction <add>, %78, %cst_38 [1] : vector<32x8xf32> to vector<32xf32>
    %80 = vector.shape_cast %79 : vector<32xf32> to vector<32x1xf32>
    %81 = tpu.reciprocal %80 {approx = true} : vector<32x1xf32> -> vector<32x1xf32>
    %82 = vector.broadcast %81 : vector<32x1xf32> to vector<32x8xf32>
    %83 = arith.mulf %78, %82 : vector<32x8xf32>
    %c0_39 = arith.constant 0 : index
    %c0_40 = arith.constant 0 : index
    %84 = vector.load %arg20[%c0_39, %c0_40] : memref<32x8xf32, #tpu.memory_space<vmem>>, vector<32x8xf32>
    tpu.vector_store %arg20[%c0_39, %c0_40], %83 {strides = array<i32>} : memref<32x8xf32, #tpu.memory_space<vmem>>, vector<32x8xf32>,
    %c0_41 = arith.constant 0 : index
    %c0_42 = arith.constant 0 : index
    %85 = vector.load %arg20[%c0_41, %c0_42] : memref<32x8xf32, #tpu.memory_space<vmem>>, vector<8x8xf32>
    %86 = arith.truncf %85 : vector<8x8xf32> to vector<8x8xbf16>
    %87 = vector.extract_strided_slice %46 {offsets = [0, 0], sizes = [8, 8], strides = [1, 1]} : vector<8x32xbf16> to vector<8x8xbf16>
    %cst_43 = arith.constant dense<0.000000e+00> : vector<8x8xf32>
    %88 = tpu.matmul %86, %87, %cst_43 {dimension_numbers = #tpu.dot_dimension_numbers<[1], [0], [0], [1], [0, 0, 1, 1], [], []>} : vector<8x8xbf16>, vector<8x8xbf16>, vector<8x8xf32> -> vector<8x8xf32>
    %c0_44 = arith.constant 0 : index
    %c0_45 = arith.constant 0 : index
    %89 = vector.load %arg21[%c0_44, %c0_45] : memref<8x32xf32, #tpu.memory_space<vmem>>, vector<8x8xf32>
    tpu.vector_store %arg21[%c0_44, %c0_45], %88 {strides = array<i32>} : memref<8x32xf32, #tpu.memory_space<vmem>>, vector<8x8xf32>,
    %c8_46 = arith.constant 8 : index
    %c0_47 = arith.constant 0 : index
    %90 = vector.load %arg20[%c8_46, %c0_47] : memref<32x8xf32, #tpu.memory_space<vmem>>, vector<8x8xf32>
    %91 = arith.truncf %90 : vector<8x8xf32> to vector<8x8xbf16>
    %92 = vector.extract_strided_slice %46 {offsets = [0, 8], sizes = [8, 8], strides = [1, 1]} : vector<8x32xbf16> to vector<8x8xbf16>
    %cst_48 = arith.constant dense<0.000000e+00> : vector<8x8xf32>
    %93 = tpu.matmul %91, %92, %cst_48 {dimension_numbers = #tpu.dot_dimension_numbers<[1], [0], [0], [1], [0, 0, 1, 1], [], []>} : vector<8x8xbf16>, vector<8x8xbf16>, vector<8x8xf32> -> vector<8x8xf32>
    %c0_49 = arith.constant 0 : index
    %c8_50 = arith.constant 8 : index
    %94 = vector.load %arg21[%c0_49, %c8_50] : memref<8x32xf32, #tpu.memory_space<vmem>>, vector<8x8xf32>
    tpu.vector_store %arg21[%c0_49, %c8_50], %93 {strides = array<i32>} : memref<8x32xf32, #tpu.memory_space<vmem>>, vector<8x8xf32>,
    %c16_51 = arith.constant 16 : index
    %c0_52 = arith.constant 0 : index
    %95 = vector.load %arg20[%c16_51, %c0_52] : memref<32x8xf32, #tpu.memory_space<vmem>>, vector<8x8xf32>
    %96 = arith.truncf %95 : vector<8x8xf32> to vector<8x8xbf16>
    %97 = vector.extract_strided_slice %46 {offsets = [0, 16], sizes = [8, 8], strides = [1, 1]} : vector<8x32xbf16> to vector<8x8xbf16>
    %cst_53 = arith.constant dense<0.000000e+00> : vector<8x8xf32>
    %98 = tpu.matmul %96, %97, %cst_53 {dimension_numbers = #tpu.dot_dimension_numbers<[1], [0], [0], [1], [0, 0, 1, 1], [], []>} : vector<8x8xbf16>, vector<8x8xbf16>, vector<8x8xf32> -> vector<8x8xf32>
    %c0_54 = arith.constant 0 : index
    %c16_55 = arith.constant 16 : index
    %99 = vector.load %arg21[%c0_54, %c16_55] : memref<8x32xf32, #tpu.memory_space<vmem>>, vector<8x8xf32>
    tpu.vector_store %arg21[%c0_54, %c16_55], %98 {strides = array<i32>} : memref<8x32xf32, #tpu.memory_space<vmem>>, vector<8x8xf32>,
    %c24_56 = arith.constant 24 : index
    %c0_57 = arith.constant 0 : index
    %100 = vector.load %arg20[%c24_56, %c0_57] : memref<32x8xf32, #tpu.memory_space<vmem>>, vector<8x8xf32>
    %101 = arith.truncf %100 : vector<8x8xf32> to vector<8x8xbf16>
    %102 = vector.extract_strided_slice %46 {offsets = [0, 24], sizes = [8, 8], strides = [1, 1]} : vector<8x32xbf16> to vector<8x8xbf16>
    %cst_58 = arith.constant dense<0.000000e+00> : vector<8x8xf32>
    %103 = tpu.matmul %101, %102, %cst_58 {dimension_numbers = #tpu.dot_dimension_numbers<[1], [0], [0], [1], [0, 0, 1, 1], [], []>} : vector<8x8xbf16>, vector<8x8xbf16>, vector<8x8xf32> -> vector<8x8xf32>
    %c0_59 = arith.constant 0 : index
    %c24_60 = arith.constant 24 : index
    %104 = vector.load %arg21[%c0_59, %c24_60] : memref<8x32xf32, #tpu.memory_space<vmem>>, vector<8x8xf32>
    tpu.vector_store %arg21[%c0_59, %c24_60], %103 {strides = array<i32>} : memref<8x32xf32, #tpu.memory_space<vmem>>, vector<8x8xf32>,
    %c0_61 = arith.constant 0 : index
    %c0_62 = arith.constant 0 : index
    %105 = vector.load %arg21[%c0_61, %c0_62] : memref<8x32xf32, #tpu.memory_space<vmem>>, vector<8x32xf32>
    %106 = arith.truncf %105 : vector<8x32xf32> to vector<8x32xbf16>
    %c0_63 = arith.constant 0 : index
    %c0_64 = arith.constant 0 : index
    %107 = vector.load %arg11[%c0_63, %c0_64] : memref<32x32xbf16, #tpu.memory_space<vmem>>, vector<32x32xbf16>
    %cst_65 = arith.constant dense<0.000000e+00> : vector<8x32xf32>
    %108 = tpu.matmul %106, %107, %cst_65 {dimension_numbers = #tpu.dot_dimension_numbers<[1], [0], [0], [1], [0, 0, 1, 1], [], []>} : vector<8x32xbf16>, vector<32x32xbf16>, vector<8x32xf32> -> vector<8x32xf32>
    %c0_66 = arith.constant 0 : index
    %c0_67 = arith.constant 0 : index
    %109 = vector.load %arg12[%c0_66, %c0_67] : memref<1x32xf32, #tpu.memory_space<vmem>>, vector<1x32xf32>
    %110 = vector.shape_cast %109 : vector<1x32xf32> to vector<32xf32>
    %111 = vector.shape_cast %110 : vector<32xf32> to vector<1x32xf32>
    %112 = vector.broadcast %111 : vector<1x32xf32> to vector<8x32xf32>
    %113 = arith.addf %108, %112 : vector<8x32xf32>
    %114 = arith.addf %113, %1 : vector<8x32xf32>
    %cst_68 = arith.constant dense<0.000000e+00> : vector<8xf32>
    %115 = vector.multi_reduction <add>, %114, %cst_68 [1] : vector<8x32xf32> to vector<8xf32>
    %116 = vector.shape_cast %115 : vector<8xf32> to vector<8x1xf32>
    %cst_69 = arith.constant 3.200000e+01 : f32
    %117 = vector.broadcast %cst_69 : f32 to vector<8x1xf32>
    %118 = arith.divf %116, %117 : vector<8x1xf32>
    %119 = arith.mulf %114, %114 : vector<8x32xf32>
    %cst_70 = arith.constant dense<0.000000e+00> : vector<8xf32>
    %120 = vector.multi_reduction <add>, %119, %cst_70 [1] : vector<8x32xf32> to vector<8xf32>
    %121 = vector.shape_cast %120 : vector<8xf32> to vector<8x1xf32>
    %cst_71 = arith.constant 3.200000e+01 : f32
    %122 = vector.broadcast %cst_71 : f32 to vector<8x1xf32>
    %123 = arith.divf %121, %122 : vector<8x1xf32>
    %124 = arith.mulf %118, %118 : vector<8x1xf32>
    %125 = arith.subf %123, %124 : vector<8x1xf32>
    %126 = vector.broadcast %118 : vector<8x1xf32> to vector<8x32xf32>
    %127 = arith.subf %114, %126 : vector<8x32xf32>
    %cst_72 = arith.constant 9.99999974E-6 : f32
    %128 = vector.broadcast %cst_72 : f32 to vector<8x1xf32>
    %129 = arith.addf %125, %128 : vector<8x1xf32>
    %130 = math.rsqrt %129 : vector<8x1xf32>
    %131 = vector.broadcast %130 : vector<8x1xf32> to vector<8x32xf32>
    %132 = arith.mulf %127, %131 : vector<8x32xf32>
    %c0_73 = arith.constant 0 : index
    %c0_74 = arith.constant 0 : index
    %133 = vector.load %arg13[%c0_73, %c0_74] : memref<1x32xf32, #tpu.memory_space<vmem>>, vector<1x32xf32>
    %134 = vector.shape_cast %133 : vector<1x32xf32> to vector<32xf32>
    %135 = vector.shape_cast %134 : vector<32xf32> to vector<1x32xf32>
    %136 = vector.broadcast %135 : vector<1x32xf32> to vector<8x32xf32>
    %137 = arith.mulf %132, %136 : vector<8x32xf32>
    %c0_75 = arith.constant 0 : index
    %c0_76 = arith.constant 0 : index
    %138 = vector.load %arg14[%c0_75, %c0_76] : memref<1x32xf32, #tpu.memory_space<vmem>>, vector<1x32xf32>
    %139 = vector.shape_cast %138 : vector<1x32xf32> to vector<32xf32>
    %140 = vector.shape_cast %139 : vector<32xf32> to vector<1x32xf32>
    %141 = vector.broadcast %140 : vector<1x32xf32> to vector<8x32xf32>
    %142 = arith.addf %137, %141 : vector<8x32xf32>
    %143 = arith.truncf %142 : vector<8x32xf32> to vector<8x32xbf16>
    %c0_77 = arith.constant 0 : index
    %c0_78 = arith.constant 0 : index
    %144 = vector.load %arg15[%c0_77, %c0_78] : memref<32x128xbf16, #tpu.memory_space<vmem>>, vector<32x128xbf16>
    %cst_79 = arith.constant dense<0.000000e+00> : vector<8x128xf32>
    %145 = tpu.matmul %143, %144, %cst_79 {dimension_numbers = #tpu.dot_dimension_numbers<[1], [0], [0], [1], [0, 0, 1, 1], [], []>} : vector<8x32xbf16>, vector<32x128xbf16>, vector<8x128xf32> -> vector<8x128xf32>
    %c0_80 = arith.constant 0 : index
    %c0_81 = arith.constant 0 : index
    %146 = vector.load %arg16[%c0_80, %c0_81] : memref<1x128xf32, #tpu.memory_space<vmem>>, vector<1x128xf32>
    %147 = vector.shape_cast %146 : vector<1x128xf32> to vector<128xf32>
    %148 = vector.shape_cast %147 : vector<128xf32> to vector<1x128xf32>
    %149 = vector.broadcast %148 : vector<1x128xf32> to vector<8x128xf32>
    %150 = arith.addf %145, %149 : vector<8x128xf32>
    %cst_82 = arith.constant 5.000000e-01 : f32
    %151 = vector.broadcast %cst_82 : f32 to vector<8x128xf32>
    %152 = arith.mulf %151, %150 : vector<8x128xf32>
    %cst_83 = arith.constant 0.707106769 : f32
    %153 = vector.broadcast %cst_83 : f32 to vector<8x128xf32>
    %154 = arith.mulf %150, %153 : vector<8x128xf32>
    %155 = math.absf %154 : vector<8x128xf32>
    %cst_84 = arith.constant 0.327591091 : f32
    %156 = vector.broadcast %cst_84 : f32 to vector<8x128xf32>
    %157 = arith.mulf %156, %155 : vector<8x128xf32>
    %cst_85 = arith.constant 1.000000e+00 : f32
    %158 = vector.broadcast %cst_85 : f32 to vector<8x128xf32>
    %159 = arith.addf %158, %157 : vector<8x128xf32>
    %cst_86 = arith.constant 1.000000e+00 : f32
    %160 = vector.broadcast %cst_86 : f32 to vector<8x128xf32>
    %161 = arith.divf %160, %159 : vector<8x128xf32>
    %cst_87 = arith.constant 1.06140542 : f32
    %162 = vector.broadcast %cst_87 : f32 to vector<8x128xf32>
    %163 = arith.mulf %162, %161 : vector<8x128xf32>
    %cst_88 = arith.constant 1.45315206 : f32
    %164 = vector.broadcast %cst_88 : f32 to vector<8x128xf32>
    %165 = arith.subf %163, %164 : vector<8x128xf32>
    %166 = arith.mulf %165, %161 : vector<8x128xf32>
    %cst_89 = arith.constant 1.42141378 : f32
    %167 = vector.broadcast %cst_89 : f32 to vector<8x128xf32>
    %168 = arith.addf %166, %167 : vector<8x128xf32>
    %169 = arith.mulf %168, %161 : vector<8x128xf32>
    %cst_90 = arith.constant 0.284496725 : f32
    %170 = vector.broadcast %cst_90 : f32 to vector<8x128xf32>
    %171 = arith.subf %169, %170 : vector<8x128xf32>
    %172 = arith.mulf %171, %161 : vector<8x128xf32>
    %cst_91 = arith.constant 0.254829586 : f32
    %173 = vector.broadcast %cst_91 : f32 to vector<8x128xf32>
    %174 = arith.addf %172, %173 : vector<8x128xf32>
    %175 = arith.mulf %174, %161 : vector<8x128xf32>
    %cst_92 = arith.constant 0.000000e+00 : f32
    %176 = vector.broadcast %cst_92 : f32 to vector<8x128xf32>
    %177 = arith.subf %176, %155 : vector<8x128xf32>
    %178 = arith.mulf %177, %155 : vector<8x128xf32>
    %179 = math.exp %178 : vector<8x128xf32>
    %180 = arith.mulf %175, %179 : vector<8x128xf32>
    %cst_93 = arith.constant 1.000000e+00 : f32
    %181 = vector.broadcast %cst_93 : f32 to vector<8x128xf32>
    %182 = arith.subf %181, %180 : vector<8x128xf32>
    %cst_94 = arith.constant 0.000000e+00 : f32
    %183 = vector.broadcast %cst_94 : f32 to vector<8x128xf32>
    %184 = arith.cmpf olt, %154, %183 : vector<8x128xf32>
    %cst_95 = arith.constant 0.000000e+00 : f32
    %185 = vector.broadcast %cst_95 : f32 to vector<8x128xf32>
    %186 = arith.subf %185, %182 : vector<8x128xf32>
    %187 = arith.select %184, %186, %182 : vector<8x128xi1>, vector<8x128xf32>
    %cst_96 = arith.constant 1.000000e+00 : f32
    %188 = vector.broadcast %cst_96 : f32 to vector<8x128xf32>
    %189 = arith.addf %188, %187 : vector<8x128xf32>
    %190 = arith.mulf %152, %189 : vector<8x128xf32>
    %191 = arith.truncf %190 : vector<8x128xf32> to vector<8x128xbf16>
    %c0_97 = arith.constant 0 : index
    %c0_98 = arith.constant 0 : index
    %192 = vector.load %arg17[%c0_97, %c0_98] : memref<128x32xbf16, #tpu.memory_space<vmem>>, vector<128x32xbf16>
    %cst_99 = arith.constant dense<0.000000e+00> : vector<8x32xf32>
    %193 = tpu.matmul %191, %192, %cst_99 {dimension_numbers = #tpu.dot_dimension_numbers<[1], [0], [0], [1], [0, 0, 1, 1], [], []>} : vector<8x128xbf16>, vector<128x32xbf16>, vector<8x32xf32> -> vector<8x32xf32>
    %c0_100 = arith.constant 0 : index
    %c0_101 = arith.constant 0 : index
    %194 = vector.load %arg18[%c0_100, %c0_101] : memref<1x32xf32, #tpu.memory_space<vmem>>, vector<1x32xf32>
    %195 = vector.shape_cast %194 : vector<1x32xf32> to vector<32xf32>
    %196 = vector.shape_cast %195 : vector<32xf32> to vector<1x32xf32>
    %197 = vector.broadcast %196 : vector<1x32xf32> to vector<8x32xf32>
    %198 = arith.addf %193, %197 : vector<8x32xf32>
    %199 = arith.addf %198, %114 : vector<8x32xf32>
    %c0_102 = arith.constant 0 : index
    %c0_103 = arith.constant 0 : index
    %c0_104 = arith.constant 0 : index
    %200 = vector.load %arg19[%c0_102, %c0_103, %c0_104] : memref<1x8x32xf32, #tpu.memory_space<vmem>>, vector<1x8x32xf32>
    %201 = vector.shape_cast %200 : vector<1x8x32xf32> to vector<8x32xf32>
    %202 = vector.shape_cast %199 : vector<8x32xf32> to vector<1x8x32xf32>
    tpu.vector_store %arg19[%c0_102, %c0_103, %c0_104], %202 {strides = array<i32>} : memref<1x8x32xf32, #tpu.memory_space<vmem>>, vector<1x8x32xf32>,
    return
  }
  func.func @transform_0(%arg0: i32, %arg1: i32) -> (i32, i32, i32) {
    %c0_i32 = arith.constant 0 : i32
    %c0_i32_0 = arith.constant 0 : i32
    %c0_i32_1 = arith.constant 0 : i32
    return %arg0, %c0_i32, %c0_i32_0 : i32, i32, i32
  }
  func.func @transform_1(%arg0: i32, %arg1: i32) -> (i32, i32) {
    %c0_i32 = arith.constant 0 : i32
    %c0_i32_0 = arith.constant 0 : i32
    %c0_i32_1 = arith.constant 0 : i32
    return %c0_i32, %c0_i32_0 : i32, i32
  }
  func.func @transform_2(%arg0: i32, %arg1: i32) -> (i32, i32) {
    %c0_i32 = arith.constant 0 : i32
    %c0_i32_0 = arith.constant 0 : i32
    %c0_i32_1 = arith.constant 0 : i32
    return %c0_i32, %c0_i32_0 : i32, i32
  }
  func.func @transform_3(%arg0: i32, %arg1: i32) -> (i32, i32) {
    %c0_i32 = arith.constant 0 : i32
    %c0_i32_0 = arith.constant 0 : i32
    %c0_i32_1 = arith.constant 0 : i32
    return %c0_i32, %c0_i32_0 : i32, i32
  }
  func.func @transform_4(%arg0: i32, %arg1: i32) -> (i32, i32) {
    %c0_i32 = arith.constant 0 : i32
    %c0_i32_0 = arith.constant 0 : i32
    %c0_i32_1 = arith.constant 0 : i32
    return %c0_i32, %c0_i32_0 : i32, i32
  }
  func.func @transform_5(%arg0: i32, %arg1: i32) -> (i32, i32) {
    %c0_i32 = arith.constant 0 : i32
    %c0_i32_0 = arith.constant 0 : i32
    %c0_i32_1 = arith.constant 0 : i32
    return %c0_i32, %c0_i32_0 : i32, i32
  }
  func.func @transform_6(%arg0: i32, %arg1: i32) -> (i32, i32) {
    %c0_i32 = arith.constant 0 : i32
    %c0_i32_0 = arith.constant 0 : i32
    %c0_i32_1 = arith.constant 0 : i32
    return %c0_i32, %c0_i32_0 : i32, i32
  }
  func.func @transform_7(%arg0: i32, %arg1: i32) -> (i32, i32) {
    %c0_i32 = arith.constant 0 : i32
    %c0_i32_0 = arith.constant 0 : i32
    %c0_i32_1 = arith.constant 0 : i32
    return %c0_i32, %c0_i32_0 : i32, i32
  }
  func.func @transform_8(%arg0: i32, %arg1: i32) -> (i32, i32) {
    %c0_i32 = arith.constant 0 : i32
    %c0_i32_0 = arith.constant 0 : i32
    %c0_i32_1 = arith.constant 0 : i32
    return %c0_i32, %c0_i32_0 : i32, i32
  }
  func.func @transform_9(%arg0: i32, %arg1: i32) -> (i32, i32) {
    %c0_i32 = arith.constant 0 : i32
    %c0_i32_0 = arith.constant 0 : i32
    %c0_i32_1 = arith.constant 0 : i32
    return %c0_i32, %c0_i32_0 : i32, i32
  }
  func.func @transform_10(%arg0: i32, %arg1: i32) -> (i32, i32) {
    %c0_i32 = arith.constant 0 : i32
    %c0_i32_0 = arith.constant 0 : i32
    %c0_i32_1 = arith.constant 0 : i32
    return %c0_i32, %c0_i32_0 : i32, i32
  }
  func.func @transform_11(%arg0: i32, %arg1: i32) -> (i32, i32) {
    %c0_i32 = arith.constant 0 : i32
    %c0_i32_0 = arith.constant 0 : i32
    %c0_i32_1 = arith.constant 0 : i32
    return %c0_i32, %c0_i32_0 : i32, i32
  }
  func.func @transform_12(%arg0: i32, %arg1: i32) -> (i32, i32) {
    %c0_i32 = arith.constant 0 : i32
    %c0_i32_0 = arith.constant 0 : i32
    %c0_i32_1 = arith.constant 0 : i32
    return %c0_i32, %c0_i32_0 : i32, i32
  }
  func.func @transform_13(%arg0: i32, %arg1: i32) -> (i32, i32) {
    %c0_i32 = arith.constant 0 : i32
    %c0_i32_0 = arith.constant 0 : i32
    %c0_i32_1 = arith.constant 0 : i32
    return %c0_i32, %c0_i32_0 : i32, i32
  }
  func.func @transform_14(%arg0: i32, %arg1: i32) -> (i32, i32) {
    %c0_i32 = arith.constant 0 : i32
    %c0_i32_0 = arith.constant 0 : i32
    %c0_i32_1 = arith.constant 0 : i32
    return %c0_i32, %c0_i32_0 : i32, i32
  }
  func.func @transform_15(%arg0: i32, %arg1: i32) -> (i32, i32) {
    %c0_i32 = arith.constant 0 : i32
    %c0_i32_0 = arith.constant 0 : i32
    %c0_i32_1 = arith.constant 0 : i32
    return %c0_i32, %c0_i32_0 : i32, i32
  }
  func.func @transform_16(%arg0: i32, %arg1: i32) -> (i32, i32) {
    %c0_i32 = arith.constant 0 : i32
    %c0_i32_0 = arith.constant 0 : i32
    %c0_i32_1 = arith.constant 0 : i32
    return %c0_i32, %c0_i32_0 : i32, i32
  }
  func.func @transform_17(%arg0: i32, %arg1: i32) -> (i32, i32, i32) {
    %c0_i32 = arith.constant 0 : i32
    %c0_i32_0 = arith.constant 0 : i32
    return %arg0, %arg1, %c0_i32 : i32, i32, i32
  }
}

</mosaic_0001>

<bundles_post_ra>
// kernel: vit_encoder_block.1
= control target key start
LH: loop header
LB: loop body
LE: loop exit
PB: predicated region body
PF: predicated region fallthrough
CT: control target
= control target key end

     0   :  { %s1586_s24 = smov 0   ;;  %s1588_s25 = smov 0   ;;  %s1786_s0 = inlined_call_operand.vmem [shape: f32[2,8,32], index: 0, kind: input, shape index: {}]   ;;  %s1787_s1 = inlined_call_operand.vmem [shape: f32[1,32], index: 1, kind: input, shape index: {}]   ;;  %s1788_s2 = inlined_call_operand.vmem [shape: f32[1,32], index: 2, kind: input, shape index: {}]   ;;  %s1789_s3 = inlined_call_operand.vmem [shape: bf16[32,32], index: 3, kind: input, shape index: {}]   ;;  %s1790_s4 = inlined_call_operand.vmem [shape: f32[1,32], index: 4, kind: input, shape index: {}]   ;;  %s1791_s5 = inlined_call_operand.vmem [shape: bf16[32,32], index: 5, kind: input, shape index: {}]   ;;  %s1792_s6 = inlined_call_operand.vmem [shape: f32[1,32], index: 6, kind: input, shape index: {}]   ;;  %s1793_s7 = inlined_call_operand.vmem [shape: bf16[32,32], index: 7, kind: input, shape index: {}]   ;;  %s1794_s8 = inlined_call_operand.vmem [shape: f32[1,32], index: 8, kind: input, shape index: {}]   ;;  %s1795_s9 = inlined_call_operand.vmem [shape: bf16[32,32], index: 9, kind: input, shape index: {}]   ;;  %s1796_s10 = inlined_call_operand.vmem [shape: f32[1,32], index: 10, kind: input, shape index: {}]   ;;  %s1797_s11 = inlined_call_operand.vmem [shape: f32[1,32], index: 11, kind: input, shape index: {}]   ;;  %s1798_s12 = inlined_call_operand.vmem [shape: f32[1,32], index: 12, kind: input, shape index: {}]   ;;  %s1799_s13 = inlined_call_operand.vmem [shape: bf16[32,128], index: 13, kind: input, shape index: {}]   ;;  %s1800_s14 = inlined_call_operand.vmem [shape: f32[1,128], index: 14, kind: input, shape index: {}]   ;;  %s1801_s15 = inlined_call_operand.vmem [shape: bf16[128,32], index: 15, kind: input, shape index: {}]   ;;  %s1802_s16 = inlined_call_operand.vmem [shape: f32[1,32], index: 16, kind: input, shape index: {}]   ;;  %s1803_s17 = inlined_call_operand.vmem [shape: f32[2,8,32], index: 17, kind: output, shape index: {}]  }
   0x1   :  { %1804 = sst [smem:[#allocation4_spill]] %s1786_s0  ;;  %s1590_s26 = smov 0  }
   0x2   :  { %1805 = sst [smem:[#allocation5_spill]] %s1787_s1 }
   0x3 LB: > { %s39_s27 = sadd.s32 1, %s1483_s25  ;;  %p1288_p0 = scmp.ge.s32.totalorder %s1487_s26, 1  ;;  %s1487_s26 = sphi %s1590_s26, %s27_s26   ;;  %s1483_s25 = sphi %s1588_s25, %s1809_s25   ;;  %s1479_s24 = sphi %s1586_s24, %s1808_s24  }
   0x4   : > { %p41_p1 = scmp.ge.s32.totalorder %s39_s27, 2  ;;  %p500_p2 = scmp.lt.s32.totalorder %s1487_s26, 3 }
   0x6   : > { %s1811_s27 = smov (%p41_p1, %s39_s27), 0  ;;  %p501_p3 = pnand %p1288_p0, %p500_p2 }
   0x7   : > { %p553_p4 = scmp.lt.s32.totalorder (!%p501_p3), %s1479_s24, 1  ;;  %s1806_s30 = sld [smem:[#allocation4_spill]] (!%p501_p3) }
   0x8   : > { %504 = sbr.rel (%p501_p3) target bundleno = 1723 (0x6bb), region = 88  ;;  %s1807_s22 = sld [smem:[#allocation5_spill]] (!%p501_p3) }
   0x9   : > { %s1490_s1 = smov (!%p501_p3), 120   ;;  %s1491_s20 = smov (!%p501_p3), 104  }
   0xa   : > { %s1492_s21 = smov (!%p501_p3), 112   ;;  %s1493_s29 = smov (!%p501_p3), 8  }
   0xb   : > { %s1494_s0 = smov (!%p501_p3), 16  }
   0xd   : > { %s1813_s24 = smov (!%p553_p4, %s1479_s24), 1  ;;  %vm566_vm0 = vcmask 261120   ;;  %v1489_v4 = vmov 32.0   ;;  %v1381_v10 = vld [vmem:[%s1791_s5 + $0x8] sm:$0xff]  ;;  %v1380_v13 = vld [vmem:[%s1791_s5] sm:$0xff]  ;;  %vm715_vm5 = vcmask 64512  }
   0xe   : > { %s1289_s28 = sshll.u32 %s1813_s24, 3  ;;  %1439 = vrcp.f32 %v1489_v4  ;;  %v1383_v11 = vld [vmem:[%s1793_s7 + $0x8] sm:$0xff]  ;;  %638 = vmatpush.bf16.msra.mxu0 %v1381_v10  ;;  %v1382_v14 = vld [vmem:[%s1793_s7] sm:$0xff]  ;;  %vm871_vm6 = vcmask 1043456   ;;  %vm919_vm7 = vcmask 130112   ;;  %vm948_vm8 = vcmask 195712  }
   0xf   : > { %s556_s18 = scalar_lea.vmem %s1806_s30, %s1289_s28  ;;  %672 = vmatpush.bf16.msra.mxu2 %v1383_v11  ;;  %v1385_v20 = vld [vmem:[%s1789_s3 + $0x8] sm:$0xff]  ;;  %v1384_v22 = vld [vmem:[%s1789_s3] sm:$0xff]  ;;  %s1495_s30 = smov 24   ;;  %vm977_vm9 = vcmask 261312  }
  0x10   : > { %v1612_v0 = vld [vmem:[%s556_s18] sm:$0xff]  ;;  %s563_s23 = scalar_lea.vmem %s1803_s17, %s1289_s28 }
  0x11   : > { %v567_v1 = vsel %vm566_vm0, %v1612_v0, 0.0  ;;  %v578_v2 = vmul.f32 %v1612_v0, %v1612_v0  ;;  %v1429_v31 = vld [vmem:[%s1807_s22] ss:$0 sm:$0xff] }
  0x12   : > { %568 = vadd.xlane.f32.xlu0 %v567_v1  ;;  %639 = vmatpush.bf16.msra.mxu0 %v1380_v13  ;;  %v1430_v34 = vld [vmem:[%s1788_s2] ss:$0 sm:$0xff] }
  0x13   : > { %v579_v3 = vsel %vm566_vm0, %v578_v2, 0.0  ;;  %673 = vmatpush.bf16.msra.mxu2 %v1382_v14  ;;  %v1431_v38 = vld [vmem:[%s1792_s6] ss:$0 sm:$0xff] }
  0x14   : > { %v1440_v5 = vpop.eup %1439  ;;  %v1432_v42 = vld [vmem:[%s1794_s8] ss:$0 sm:$0xff] }
  0x15   : > { %v571_v6 = vmul.f32 32.0, %v1440_v5  ;;  %vm575_vm1 = vweird.f32 %v1440_v5  ;;  %v1433_v52 = vld [vmem:[%s1790_s4] ss:$0 sm:$0xff] }
  0x17   : > { %v572_v7 = vsub.f32 1.0, %v571_v6  ;;  %706 = vmatpush.bf16.msrb.mxu2 %v1385_v20 }
  0x19   : > { %v573_v8 = vmul.f32 %v1440_v5, %v572_v7 }
  0x1a   : > { %580 = vadd.xlane.f32.xlu0 %v579_v3 }
  0x1b   : > { %v574_v9 = vadd.f32 %v1440_v5, %v573_v8  ;;  %707 = vmatpush.bf16.msrb.mxu2 %v1384_v22 }
  0x1d   : > { %v1631_v15 = vsel %vm575_vm1, %v1440_v5, %v574_v9 }
  0x85   : > { %v569_v12 = vpop.xlane.xlu0 %568 }
  0x86   : > { %v577_v16 = vmul.f32 %v1631_v15, %v569_v12 }
  0x88   : > { %v583_v18 = vmul.f32 %v577_v16, %v577_v16  ;;  %v585_v30 = vsub.f32 %v1612_v0, %v577_v16 }
  0x8d   : > { %v581_v17 = vpop.xlane.xlu0 %580 }
  0x8e   : > { %v582_v19 = vmul.f32 %v581_v17, %v1631_v15 }
  0x90   : > { %v584_v21 = vsub.f32 %v582_v19, %v583_v18 }
  0x92   : > { %v586_v23 = vadd.f32 1e-05, %v584_v21 }
  0x94   : > { %1441 = vrsqrt.f32 %v586_v23  ;;  %vm593_vm3 = vweird.f32 %v586_v23 }
  0x9a   : > { %v1442_v24 = vpop.eup %1441 }
  0x9b   : > { %v588_v25 = vmul.f32 %v1442_v24, %v586_v23  ;;  %vm594_vm2 = vweird.f32 %v1442_v24 }
  0x9c   : > { %vm595_vm4 = vmor %vm593_vm3, %vm594_vm2 }
  0x9d   : > { %v589_v26 = vmul.f32 %v1442_v24, %v588_v25 }
  0x9f   : > { %v590_v27 = vmul.f32 0.5, %v589_v26 }
  0xa1   : > { %v591_v28 = vsub.f32 1.5, %v590_v27 }
  0xa3   : > { %v592_v29 = vmul.f32 %v1442_v24, %v591_v28 }
  0xa5   : > { %v596_v32 = vsel %vm595_vm4, %v1442_v24, %v592_v29 }
  0xa6   : > { %v597_v33 = vmul.f32 %v596_v32, %v585_v30 }
  0xa8   : > { %v602_v35 = vmul.f32 %v1429_v31, %v597_v33 }
  0xaa   : > { %v607_v36 = vadd.f32 %v1430_v34, %v602_v35 }
  0xac   : > { %v608_v37 = vpack.c.bf16 %v607_v36, %v607_v36 }
  0xae   : > { %1299 = vmatmul.msk.bf16.vlgmr.msra.gmra.mxu0 %vm566_vm0, %v608_v37  ;;  %1308 = vmatmul.msk.bf16.vlgmr.msra.gmra.mxu2 %vm566_vm0, %v608_v37 }
  0xbe   : > { %1317 = vmatmul.msk.bf16.vlgmr.msrb.gmra.mxu2 %vm566_vm0, %v608_v37 }
 0x12b   : > { %v641_v39 = vpop.f32.mrf.mxu0 }
 0x12c   : > { %v642_v40 = vadd.f32 %v1431_v38, %v641_v39 }
 0x12e   : > { %v645_v41 = vpack.c.bf16 %v642_v40, %v642_v40 }
 0x130   : > { %v742_v43 = vunpack.c.l.b16 %v645_v41  ;;  %v720_v44 = vsel %vm715_vm5, %v645_v41, 0 }
 0x131   : > { %v675_v45 = vpop.f32.mrf.mxu2  ;;  %729 = vmatpush.bf16.xpose.msra.mxu3 %v720_v44 }
 0x132   : > { %v743_v46 = vpack.c.b16 %v742_v43, %v742_v43  ;;  %v676_v47 = vadd.f32 %v1432_v42, %v675_v45 }
 0x133   : > { %v643_v48 = vpop.f32.mrf.mxu0 }
 0x134   : > { %v1658_v49 = vpack.c.bf16 %v676_v47, %v676_v47  ;;  %744 = vrot.lane.b32.xlu2 %v743_v46, %s1490_s1  ;;  %792 = vrot.lane.b32.xlu1 %v743_v46, %s1491_s20 }
 0x136   : > { %v873_v50 = vsel %vm871_vm6, %v1658_v49, 0  ;;  %v892_v23 = vunpack.c.l.b16 %v1658_v49 }
 0x138   : > { %v893_v24 = vpack.c.b16 %v892_v23, %v892_v23 }
 0x139   : > { %882 = vmatpush.bf16.msrb.mxu3 %v873_v50  ;;  %v677_v51 = vpop.f32.mrf.mxu2 }
 0x13c   : > { %768 = vrot.lane.b32.xlu2 %v743_v46, %s1492_s21 }
 0x141   : > { %v709_v53 = vpop.f32.mrf.mxu2 }
 0x142   : > { %v710_v54 = vadd.f32 %v1433_v52, %v709_v53 }
 0x144   : > { %v713_v55 = vmul.f32 0.35355338, %v710_v54 }
 0x146   : > { %v714_v56 = vpack.c.bf16 %v713_v55, %v713_v55 }
 0x148   : > { %v737_v57 = vunpack.c.l.b16 %v714_v56  ;;  %1318 = vmatmul.msk.bf16.vlgmr.msra.gmra.mxu3 %vm715_vm5, %v714_v56 }
 0x149   : > { %v711_v58 = vpop.f32.mrf.mxu2 }
 0x14a   : > { %v738_v59 = vpack.c.b16 %v737_v57, %v737_v57 }
 0x14c   : > { %739 = vrot.lane.b32.xlu0 %v738_v59, %s1490_s1  ;;  %790 = vrot.lane.b32.xlu1 %v738_v59, %s1491_s20 }
 0x154   : > { %766 = vrot.lane.b32.xlu1 %v738_v59, %s1492_s21 }
 0x18e   : > { %v745_v60 = vpop.permute.xlu2 %744 }
 0x18f   : > { %v750_v61 = vsel %vm715_vm5, %v745_v60, 0 }
 0x190   : > { %759 = vmatpush.bf16.xpose.msrb.mxu0 %v750_v61 }
 0x196   : > { %v769_v62 = vpop.permute.xlu2 %768 }
 0x197   : > { %v774_v63 = vsel %vm715_vm5, %v769_v62, 0 }
 0x198   : > { %783 = vmatpush.bf16.xpose.msra.mxu1 %v774_v63 }
 0x1a6   : > { %v793_v1 = vpop.permute.xlu1 %792 }
 0x1a7   : > { %v798_v2 = vsel %vm715_vm5, %v793_v1, 0 }
 0x1a8   : > { %807 = vmatpush.bf16.xpose.msra.mxu2 %v798_v2 }
 0x1be   : > { %v740_v3 = vpop.permute.xlu0 %739  ;;  %v791_v4 = vpop.permute.xlu1 %790 }
 0x1bf   : > { %1319 = vmatmul.msk.bf16.vlgmr.msrb.gmra.mxu0 %vm715_vm5, %v740_v3  ;;  %1321 = vmatmul.msk.bf16.vlgmr.msra.gmra.mxu2 %vm715_vm5, %v791_v4 }
 0x1c6   : > { %v767_v5 = vpop.permute.xlu1 %766 }
 0x1c7   : > { %1320 = vmatmul.msk.bf16.vlgmr.msra.gmra.mxu1 %vm715_vm5, %v767_v5 }
 0x1cb   : > { %v731_v6 = vpop.f32.mrf.mxu3 }
 0x1cc   : > { %735 = vst.msk [vmem:[#allocation2] sm:$0xff] %vm715_vm5, %v731_v6 }
 0x1d3   : > { %v733_v7 = vpop.f32.mrf.mxu3  ;;  %v814_v21 = vld [vmem:[#allocation2] sm:$0xff] }
 0x1d4   : > { %v818_v22 = vsel %vm715_vm5, %v814_v21, -inf }
 0x23c   : > { %v761_v8 = vpop.f32.mrf.mxu0 }
 0x23d   : > { %765 = vst.msk [vmem:[#allocation2 + $0x8] sm:$0xff] %vm715_vm5, %v761_v8 }
 0x242   : > { %v809_v9 = vpop.f32.mrf.mxu2 }
 0x243   : > { %813 = vst.msk [vmem:[#allocation2 + $0x18] sm:$0xff] %vm715_vm5, %v809_v9 }
 0x244   : > { %v763_v10 = vpop.f32.mrf.mxu0  ;;  %v785_v11 = vpop.f32.mrf.mxu1  ;;  %v815_v12 = vld [vmem:[#allocation2 + $0x8] sm:$0xff] }
 0x245   : > { %789 = vst.msk [vmem:[#allocation2 + $0x10] sm:$0xff] %vm715_vm5, %v785_v11  ;;  %v821_v13 = vsel %vm715_vm5, %v815_v12, -inf }
 0x246   : > { %822 = vmax.xlane.f32.xlu1 %v821_v13 }
 0x24a   : > { %v811_v14 = vpop.f32.mrf.mxu2  ;;  %v817_v16 = vld [vmem:[#allocation2 + $0x18] sm:$0xff] }
 0x24b   : > { %v827_v17 = vsel %vm715_vm5, %v817_v16, -inf }
 0x24c   : > { %828 = vmax.xlane.f32.xlu2 %v827_v17  ;;  %v787_v18 = vpop.f32.mrf.mxu1  ;;  %v816_v19 = vld [vmem:[#allocation2 + $0x10] sm:$0xff]  ;;  %v1387_v17 = vld [vmem:[%s1795_s9 + $0x8] sm:$0xff] }
 0x24d   : > { %v824_v20 = vsel %vm715_vm5, %v816_v19, -inf  ;;  %1010 = vmatpush.bf16.msra.mxu3 %v1387_v17  ;;  %v1386_v18 = vld [vmem:[%s1795_s9] sm:$0xff] }
 0x24e   : > { %825 = vmax.xlane.f32.xlu0 %v824_v20 }
 0x251   : > { %1011 = vmatpush.bf16.msra.mxu3 %v1386_v18 }
 0x254   : > { %819 = vmax.xlane.f32.xlu2 %v818_v22 }
 0x262   : > { %894 = vrot.lane.b32.xlu0 %v893_v24, %s1490_s1 }
 0x2b9   : > { %v823_v25 = vpop.xlane.xlu1 %822 }
 0x2ba   : > { %v831_v26 = vsub.f32 %v815_v12, %v823_v25 }
 0x2bc   : > { %v836_v27 = vmul.f32 1.442695, %v831_v26 }
 0x2be   : > { %1443 = vpow2.f32 %v836_v27 }
 0x2bf   : > { %v829_v28 = vpop.xlane.xlu2 %828 }
 0x2c0   : > { %v833_v31 = vsub.f32 %v817_v16, %v829_v28 }
 0x2c1   : > { %v826_v29 = vpop.xlane.xlu0 %825 }
 0x2c2   : > { %v832_v30 = vsub.f32 %v816_v19, %v826_v29  ;;  %v840_v35 = vmul.f32 1.442695, %v833_v31 }
 0x2c4   : > { %v1444_v32 = vpop.eup %1443  ;;  %v838_v33 = vmul.f32 1.442695, %v832_v30 }
 0x2c5   : > { %v845_v34 = vsel %vm715_vm5, %v1444_v32, 0.0 }
 0x2c6   : > { %1445 = vpow2.f32 %v838_v33  ;;  %846 = vadd.xlane.f32.xlu1 %v845_v34 }
 0x2c7   : > { %v820_v36 = vpop.xlane.xlu2 %819  ;;  %1447 = vpow2.f32 %v840_v35 }
 0x2c8   : > { %v830_v37 = vsub.f32 %v814_v21, %v820_v36 }
 0x2ca   : > { %v834_v38 = vmul.f32 1.442695, %v830_v37 }
 0x2cc   : > { %v1446_v39 = vpop.eup %1445  ;;  %1449 = vpow2.f32 %v834_v38 }
 0x2cd   : > { %v848_v40 = vsel %vm715_vm5, %v1446_v39, 0.0  ;;  %v1448_v41 = vpop.eup %1447 }
 0x2ce   : > { %849 = vadd.xlane.f32.xlu2 %v848_v40  ;;  %v851_v46 = vsel %vm715_vm5, %v1448_v41, 0.0 }
 0x2d2   : > { %v1450_v42 = vpop.eup %1449 }
 0x2d3   : > { %v842_v43 = vsel %vm715_vm5, %v1450_v42, 0.0 }
 0x2d4   : > { %v895_v44 = vpop.permute.xlu0 %894  ;;  %843 = vadd.xlane.f32.xlu0 %v842_v43 }
 0x2d5   : > { %v900_v45 = vsel %vm871_vm6, %v895_v44, 0 }
 0x2d6   : > { %909 = vmatpush.bf16.msra.mxu0 %v900_v45  ;;  %852 = vadd.xlane.f32.xlu2 %v851_v46 }
 0x2df   : > { %952 = vrot.lane.b32.xlu1 %v893_v24, %s1491_s20 }
 0x2ee   : > { %923 = vrot.lane.b32.xlu2 %v893_v24, %s1492_s21  ;;  %v1434_v24 = vld [vmem:[%s1796_s10] ss:$0 sm:$0xff] }
 0x339   : > { %v847_v47 = vpop.xlane.xlu1 %846 }
 0x33a   : > { %1451 = vrcp.f32 %v847_v47  ;;  %v1435_v47 = vld [vmem:[%s1797_s11] ss:$0 sm:$0xff] }
 0x340   : > { %v1452_v48 = vpop.eup %1451 }
 0x341   : > { %v859_v49 = vmul.f32 %v1452_v48, %v1444_v32  ;;  %v850_v50 = vpop.xlane.xlu2 %849  ;;  %v1389_v32 = vld [vmem:[%s1799_s13 + $0x8] sm:$0xff] }
 0x342   : > { %1453 = vrcp.f32 %v850_v50  ;;  %1082 = vmatpush.bf16.msrb.mxu0 %v1389_v32 }
 0x343   : > { %863 = vst.msk [vmem:[#allocation2 + $0x8] sm:$0xff] %vm715_vm5, %v859_v49  ;;  %v1436_v49 = vld [vmem:[%s1798_s12] ss:$0 sm:$0xff] }
 0x347   : > { %v844_v51 = vpop.xlane.xlu0 %843 }
 0x348   : > { %v1454_v52 = vpop.eup %1453  ;;  %1455 = vrcp.f32 %v844_v51 }
 0x349   : > { %v860_v53 = vmul.f32 %v1454_v52, %v1446_v39  ;;  %v853_v54 = vpop.xlane.xlu2 %852 }
 0x34a   : > { %1457 = vrcp.f32 %v853_v54  ;;  %v889_v55 = vld [vmem:[#allocation2 + $0x8] sm:$0xff]  ;;  %v1437_v54 = vld [vmem:[%s1800_s14] ss:$0 sm:$0xff] }
 0x34b   : > { %864 = vst.msk [vmem:[#allocation2 + $0x10] sm:$0xff] %vm715_vm5, %v860_v53  ;;  %v890_v56 = vpack.c.bf16 %v889_v55, %v889_v55  ;;  %v1397_v53 = vld [vmem:[%s1801_s15 + $0x38] sm:$0xff]  ;;  %v1396_v55 = vld [vmem:[%s1801_s15 + $0x30] sm:$0xff] }
 0x34d   : > { %1323 = vmatmul.msk.bf16.vlgmr.msra.gmra.mxu0 %vm715_vm5, %v890_v56 }
 0x34e   : > { %v1456_v57 = vpop.eup %1455 }
 0x34f   : > { %v858_v58 = vmul.f32 %v1456_v57, %v1450_v42 }
 0x350   : > { %v1458_v59 = vpop.eup %1457 }
 0x351   : > { %862 = vst.msk [vmem:[#allocation2] sm:$0xff] %vm715_vm5, %v858_v58  ;;  %v861_v60 = vmul.f32 %v1458_v59, %v1448_v41  ;;  %v953_v61 = vpop.permute.xlu1 %952  ;;  %v924_v62 = vpop.permute.xlu2 %923  ;;  %v1395_v59 = vld [vmem:[%s1801_s15 + $0x28] sm:$0xff] }
 0x352   : > { %v958_v63 = vsel %vm871_vm6, %v953_v61, 0  ;;  %v929_v1 = vsel %vm871_vm6, %v924_v62, 0  ;;  %v921_v2 = vld [vmem:[#allocation2 + $0x10] sm:$0xff]  ;;  %v1394_v62 = vld [vmem:[%s1801_s15 + $0x20] sm:$0xff] }
 0x353   : > { %865 = vst.msk [vmem:[#allocation2 + $0x18] sm:$0xff] %vm715_vm5, %v861_v60  ;;  %938 = vmatpush.bf16.msrb.mxu1 %v929_v1  ;;  %967 = vmatpush.bf16.msrb.mxu2 %v958_v63  ;;  %v922_v3 = vpack.c.bf16 %v921_v2, %v921_v2  ;;  %v1393_v2 = vld [vmem:[%s1801_s15 + $0x18] sm:$0xff] }
 0x356   : > { %1324 = vmatmul.msk.bf16.vlgmr.msrb.gmra.mxu1 %vm715_vm5, %v922_v3  ;;  %v1392_v3 = vld [vmem:[%s1801_s15 + $0x10] sm:$0xff] }
 0x357   : > { %1198 = vmatpush.bf16.msra.mxu1 %v1397_v53 }
 0x358   : > { %v866_v4 = vld [vmem:[#allocation2] sm:$0xff] }
 0x359   : > { %v867_v5 = vpack.c.bf16 %v866_v4, %v866_v4 }
 0x35a   : > { %v950_v6 = vld [vmem:[#allocation2 + $0x18] sm:$0xff] }
 0x35b   : > { %1322 = vmatmul.msk.bf16.vlgmr.msrb.gmra.mxu3 %vm715_vm5, %v867_v5  ;;  %v951_v7 = vpack.c.bf16 %v950_v6, %v950_v6  ;;  %1199 = vmatpush.bf16.msra.mxu1 %v1396_v55  ;;  %v1391_v6 = vld [vmem:[%s1801_s15 + $0x8] sm:$0xff] }
 0x35d   : > { %1325 = vmatmul.msk.bf16.vlgmr.msrb.gmra.mxu2 %vm715_vm5, %v951_v7 }
 0x35f   : > { %1200 = vmatpush.bf16.msra.mxu1 %v1395_v59 }
 0x363   : > { %1201 = vmatpush.bf16.msra.mxu1 %v1394_v62 }
 0x367   : > { %1202 = vmatpush.bf16.msra.mxu1 %v1393_v2 }
 0x36b   : > { %1203 = vmatpush.bf16.msra.mxu1 %v1392_v3 }
 0x36f   : > { %1204 = vmatpush.bf16.msra.mxu1 %v1391_v6 }
 0x3ca   : > { %v911_v8 = vpop.f32.mrf.mxu0 }
 0x3cb   : > { %916 = vrot.lane.b32.xlu1 %v911_v8, %s1493_s29 }
 0x3d2   : > { %v913_v9 = vpop.f32.mrf.mxu0 }
 0x3d3   : > { %v940_v10 = vpop.f32.mrf.mxu1 }
 0x3d4   : > { %945 = vrot.lane.b32.xlu2 %v940_v10, %s1494_s0 }
 0x3db   : > { %v942_v11 = vpop.f32.mrf.mxu1 }
 0x3dc   : > { %v1390_v11 = vld [vmem:[%s1801_s15] sm:$0xff] }
 0x3dd   : > { %1205 = vmatpush.bf16.msra.mxu1 %v1390_v11 }
 0x3de   : > { %v884_v12 = vpop.f32.mrf.mxu3 }
 0x3df   : > { %888 = vst.msk [vmem:[#allocation3] sm:$0xff] %vm715_vm5, %v884_v12 }
 0x3e0   : > { %v969_v13 = vpop.f32.mrf.mxu2 }
 0x3e1   : > { %974 = vrot.lane.b32.xlu1 %v969_v13, %s1495_s30 }
 0x3e6   : > { %v886_v14 = vpop.f32.mrf.mxu3 }
 0x3e8   : > { %v971_v16 = vpop.f32.mrf.mxu2 }
 0x42e   : > { %v946_v20 = vpop.permute.xlu2 %945 }
 0x43d   : > { %v917_v19 = vpop.permute.xlu1 %916 }
 0x43e   : > { %920 = vst.msk [vmem:[#allocation3] sm:$0xff] %vm919_vm7, %v917_v19 }
 0x43f   : > { %949 = vst.msk [vmem:[#allocation3] sm:$0xff] %vm948_vm8, %v946_v20 }
 0x453   : > { %v975_v21 = vpop.permute.xlu1 %974 }
 0x454   : > { %978 = vst.msk [vmem:[#allocation3] sm:$0xff] %vm977_vm9, %v975_v21 }
 0x45b   : > { %v979_v22 = vld [vmem:[#allocation3] sm:$0xff] }
 0x45c   : > { %v980_v23 = vpack.c.bf16 %v979_v22, %v979_v22 }
 0x45e   : > { %1334 = vmatmul.msk.bf16.vlgmr.msra.gmra.mxu3 %vm566_vm0, %v980_v23 }
 0x4e1   : > { %v1013_v25 = vpop.f32.mrf.mxu3 }
 0x4e2   : > { %v1014_v26 = vadd.f32 %v1434_v24, %v1013_v25 }
 0x4e4   : > { %v1717_v27 = vadd.f32 %v1014_v26, %v1612_v0  ;;  %v1388_v0 = vld [vmem:[%s1799_s13] sm:$0xff] }
 0x4e5   : > { %1083 = vmatpush.bf16.msrb.mxu0 %v1388_v0 }
 0x4e6   : > { %v1018_v28 = vsel %vm566_vm0, %v1717_v27, 0.0  ;;  %v1022_v29 = vmul.f32 %v1717_v27, %v1717_v27 }
 0x4e7   : > { %1019 = vadd.xlane.f32.xlu2 %v1018_v28 }
 0x4e8   : > { %v1023_v30 = vsel %vm566_vm0, %v1022_v29, 0.0 }
 0x4e9   : > { %v1015_v31 = vpop.f32.mrf.mxu3  ;;  %1024 = vadd.xlane.f32.xlu1 %v1023_v30 }
 0x55a   : > { %v1020_v33 = vpop.xlane.xlu2 %1019 }
 0x55b   : > { %v1021_v34 = vmul.f32 %v1020_v33, %v1631_v15 }
 0x55c   : > { %v1025_v35 = vpop.xlane.xlu1 %1024 }
 0x55d   : > { %v1027_v36 = vmul.f32 %v1021_v34, %v1021_v34  ;;  %v1026_v37 = vmul.f32 %v1025_v35, %v1631_v15  ;;  %v1029_v46 = vsub.f32 %v1717_v27, %v1021_v34 }
 0x55f   : > { %v1028_v38 = vsub.f32 %v1026_v37, %v1027_v36 }
 0x561   : > { %v1030_v39 = vadd.f32 1e-05, %v1028_v38  ;;  %v1438_v38 = vld [vmem:[%s1802_s16] ss:$0 sm:$0xff] }
 0x563   : > { %1459 = vrsqrt.f32 %v1030_v39  ;;  %vm1037_vm11 = vweird.f32 %v1030_v39 }
 0x569   : > { %v1460_v40 = vpop.eup %1459 }
 0x56a   : > { %v1032_v41 = vmul.f32 %v1460_v40, %v1030_v39  ;;  %vm1038_vm10 = vweird.f32 %v1460_v40 }
 0x56b   : > { %vm1039_vm12 = vmor %vm1037_vm11, %vm1038_vm10 }
 0x56c   : > { %v1033_v42 = vmul.f32 %v1460_v40, %v1032_v41 }
 0x56e   : > { %v1034_v43 = vmul.f32 0.5, %v1033_v42 }
 0x570   : > { %v1035_v44 = vsub.f32 1.5, %v1034_v43 }
 0x572   : > { %v1036_v45 = vmul.f32 %v1460_v40, %v1035_v44 }
 0x574   : > { %v1040_v48 = vsel %vm1039_vm12, %v1460_v40, %v1036_v45 }
 0x575   : > { %v1041_v15 = vmul.f32 %v1040_v48, %v1029_v46 }
 0x577   : > { %v1046_v50 = vmul.f32 %v1435_v47, %v1041_v15 }
 0x579   : > { %v1051_v51 = vadd.f32 %v1436_v49, %v1046_v50 }
 0x57b   : > { %v1052_v52 = vpack.c.bf16 %v1051_v51, %v1051_v51 }
 0x57d   : > { %1343 = vmatmul.msk.bf16.vlgmr.msrb.gmra.mxu0 %vm566_vm0, %v1052_v52 }
 0x5fa   : > { %v1085_v56 = vpop.f32.mrf.mxu0 }
 0x5fb   : > { %v1086_v57 = vadd.f32 %v1437_v54, %v1085_v56 }
 0x5fd   : > { %v1090_v58 = vmul.f32 0.70710677, %v1086_v57  ;;  %v1089_v34 = vmul.f32 0.5, %v1086_v57 }
 0x5ff   : > { %v1091_v60 = vand.u32 2147483647, %v1090_v58  ;;  %vm1124_vm2 = vcmp.lt.f32.partialorder %v1090_v58, 0.0 }
 0x601   : > { %v1092_v61 = vmul.f32 0.3275911, %v1091_v60  ;;  %v1118_v17 = vsub.f32 0.0, %v1091_v60 }
 0x602   : > { %v1087_v63 = vpop.f32.mrf.mxu0 }
 0x603   : > { %v1093_v1 = vadd.f32 1.0, %v1092_v61  ;;  %v1119_v20 = vmul.f32 %v1118_v17, %v1091_v60 }
 0x605   : > { %1461 = vrcp.f32 %v1093_v1  ;;  %v1105_v8 = vand.u32 2147483648, %v1093_v1  ;;  %v1103_v10 = vand.u32 2147483647, %v1093_v1  ;;  %vm1099_vm14 = vweird.f32 %v1093_v1 }
 0x606   : > { %v1120_v23 = vmul.f32 1.442695, %v1119_v20 }
 0x607   : > { %v1106_v13 = vor.u32 1.1754944e-38, %v1105_v8  ;;  %vm1104_vm1 = vcmp.eq.f32.partialorder %v1103_v10, 8.507059e+37 }
 0x608   : > { %1463 = vpow2.f32 %v1120_v23 }
 0x60b   : > { %v1462_v4 = vpop.eup %1461 }
 0x60c   : > { %v1095_v5 = vmul.f32 %v1462_v4, %v1093_v1  ;;  %vm1100_vm13 = vweird.f32 %v1462_v4 }
 0x60d   : > { %vm1101_vm15 = vmor %vm1099_vm14, %vm1100_vm13 }
 0x60e   : > { %v1096_v7 = vsub.f32 1.0, %v1095_v5  ;;  %v1464_v30 = vpop.eup %1463 }
 0x610   : > { %v1097_v9 = vmul.f32 %v1462_v4, %v1096_v7 }
 0x612   : > { %v1098_v12 = vadd.f32 %v1462_v4, %v1097_v9 }
 0x614   : > { %v1102_v14 = vsel %vm1101_vm15, %v1462_v4, %v1098_v12 }
 0x615   : > { %v1107_v16 = vsel %vm1104_vm1, %v1106_v13, %v1102_v14 }
 0x616   : > { %v1109_v18 = vmul.f32 1.0614054, %v1107_v16 }
 0x618   : > { %v1344_v19 = vadd.f32 -1.4531521, %v1109_v18 }
 0x61a   : > { %v1111_v21 = vmul.f32 %v1344_v19, %v1107_v16 }
 0x61c   : > { %v1112_v22 = vadd.f32 1.4214138, %v1111_v21 }
 0x61e   : > { %v1113_v24 = vmul.f32 %v1112_v22, %v1107_v16 }
 0x620   : > { %v1345_v25 = vadd.f32 -0.28449672, %v1113_v24 }
 0x622   : > { %v1115_v26 = vmul.f32 %v1345_v25, %v1107_v16 }
 0x624   : > { %v1116_v28 = vadd.f32 0.2548296, %v1115_v26 }
 0x626   : > { %v1117_v29 = vmul.f32 %v1116_v28, %v1107_v16 }
 0x628   : > { %v1122_v31 = vmul.f32 %v1464_v30, %v1117_v29 }
 0x62a   : > { %v1123_v32 = vsub.f32 1.0, %v1122_v31 }
 0x62c   : > { %v1125_v0 = vsub.f32 0.0, %v1123_v32 }
 0x62e   : > { %v1126_v33 = vsel %vm1124_vm2, %v1125_v0, %v1123_v32 }
 0x62f   : > { %v1127_v35 = vadd.f32 1.0, %v1126_v33 }
 0x631   : > { %v1128_v36 = vmul.f32 %v1127_v35, %v1089_v34 }
 0x633   : > { %v1129_v37 = vpack.c.bf16 %v1128_v36, %v1128_v36 }
 0x635   : > { %1206 = vmatmul.bf16.vlgmr.msra.gmra.mxu1 %v1129_v37 }
 0x6b2   : > { %v1207_v39 = vpop.f32.mrf.mxu1 }
 0x6b3   : > { %v1208_v40 = vadd.f32 %v1438_v38, %v1207_v39 }
 0x6b5   : > { %v1211_v41 = vadd.f32 %v1208_v40, %v1717_v27 }
 0x6b7   : > { %1212 = vst.msk [vmem:[%s563_s23] sm:$0xff] %vm566_vm0, %v1211_v41 }
 0x6ba   : > { %v1209_v42 = vpop.f32.mrf.mxu1 }
 0x6bb PF: > { %s27_s26 = sadd.s32 1, %s1487_s26   ;;  %s1808_s24 = smov %s1483_s25 }
 0x6bc   : > { %p24_p5 = scmp.ge.s32.totalorder %s27_s26, 4   ;;  %s1809_s25 = smov %s1811_s27 }
 0x6be   :  { %26 = sbr.rel (!%p24_p5) target bundleno = 3 (0x3), region = 118 }

</bundles_post_ra>
